<compile_context>
chip_gen: v5e
topology: v5e:2x2
jax: 0.10.0
libtpu: 0.0.40
codegen_flags: <defaults>
</compile_context>

<pallas_src>
import functools
import math

import jax
import jax.numpy as jnp
from jax.experimental import pallas as pl
from jax.experimental.pallas import tpu as pltpu

# Logical (PyTorch) dims
IN_FEATURES = 324
HIDDEN1 = 100          # nn=100 default
HIDDEN2 = 100
OUT_FEATURES = 20

# Lane-padded dims (multiples of 128)
def _round_up(x, m):
    return ((x + m - 1) // m) * m

IN_PAD = _round_up(IN_FEATURES, 128)    # 384
H1_PAD = _round_up(HIDDEN1, 128)        # 128
H2_PAD = _round_up(HIDDEN2, 128)        # 128
OUT_PAD = _round_up(OUT_FEATURES, 128)  # 128

_NEG = -1.0e30  # finite "-inf" for padded class lanes


def simple_2l_kernel(x_ref, w1_ref, b1_ref, w2_ref, b2_ref, w3_ref, b3_ref, o_ref):
    # dense1 + ReLU (bf16 MXU inputs, f32 accumulate)
    x = x_ref[...]                                                    # (TB, IN_PAD) bf16
    h1 = jnp.dot(x, w1_ref[...], preferred_element_type=jnp.float32) + b1_ref[...]
    h1 = jnp.maximum(h1, 0.0)

    # TODO(synk): Dropout(p=0.5) after dense1/dense2 is identity in eval mode;
    # torch's training-mode RNG stream is not reproduced here.

    # dense2 + ReLU
    h2 = jnp.dot(h1.astype(jnp.bfloat16), w2_ref[...],
                 preferred_element_type=jnp.float32) + b2_ref[...]
    h2 = jnp.maximum(h2, 0.0)

    # dense3 -> logits over the lane-dense (padded) class axis
    logits = jnp.dot(h2.astype(jnp.bfloat16), w3_ref[...],
                     preferred_element_type=jnp.float32) + b3_ref[...]

    # Mask padded class lanes so they don't inflate max / sum(exp(...))
    lane = jax.lax.broadcasted_iota(jnp.int32, logits.shape, dimension=1)
    logits = jnp.where(lane < OUT_FEATURES, logits, _NEG)

    # Numerically stable log_softmax over dim=1 (only real lanes contribute)
    m = jnp.max(logits, axis=1, keepdims=True)
    z = logits - m
    lse = jnp.log(jnp.sum(jnp.exp(z), axis=1, keepdims=True))
    o_ref[...] = (z - lse).astype(o_ref.dtype)                        # full 128-lane store


@functools.partial(jax.jit, static_argnames=("tb",))
def simple_2l_forward(x, w1, b1, w2, b2, w3, b3, *, tb=512):
    """x: (B, 324) f32. Weights/biases already lane-padded (see init_params)."""
    B = x.shape[0]
    tb = min(tb, _round_up(B, 8))
    b_pad = _round_up(B, tb)

    # Pad batch + features, cast matmul operand to bf16 (halves x DMA bytes).
    x_p = jnp.zeros((b_pad, IN_PAD), jnp.bfloat16)
    x_p = x_p.at[:B, :IN_FEATURES].set(x.astype(jnp.bfloat16))

    grid = (b_pad // tb,)
    out = pl.pallas_call(
        simple_2l_kernel,
        out_shape=jax.ShapeDtypeStruct((b_pad, OUT_PAD), jnp.float32),
        grid=grid,
        in_specs=[
            pl.BlockSpec((tb, IN_PAD), lambda i: (i, 0)),      # x: streamed over batch
            pl.BlockSpec((IN_PAD, H1_PAD), lambda i: (0, 0)),  # weights: VMEM-resident
            pl.BlockSpec((1, H1_PAD), lambda i: (0, 0)),
            pl.BlockSpec((H1_PAD, H2_PAD), lambda i: (0, 0)),
            pl.BlockSpec((1, H2_PAD), lambda i: (0, 0)),
            pl.BlockSpec((H2_PAD, OUT_PAD), lambda i: (0, 0)),
            pl.BlockSpec((1, OUT_PAD), lambda i: (0, 0)),
        ],
        out_specs=pl.BlockSpec((tb, OUT_PAD), lambda i: (i, 0)),
        compiler_params=pltpu.CompilerParams(
            dimension_semantics=("parallel",),  # shards batch tiles across TCs on v7x
        ),
    )(x_p, w1, b1, w2, b2, w3, b3)

    return out[:B, :OUT_FEATURES]


def init_params(key):
    """torch.nn.Linear-style init U(-1/sqrt(in), 1/sqrt(in)); weights stored
    as (in, out) so the kernel does x @ W (== x @ W_torch^T), then zero-padded
    to lane-aligned shapes and cast to bf16 (weights) / kept f32 (biases)."""
    ks = jax.random.split(key, 6)
    bnd1 = 1.0 / math.sqrt(IN_FEATURES)
    bnd2 = 1.0 / math.sqrt(HIDDEN1)
    bnd3 = 1.0 / math.sqrt(HIDDEN2)

    w1 = jax.random.uniform(ks[0], (IN_FEATURES, HIDDEN1), jnp.float32, -bnd1, bnd1)
    b1 = jax.random.uniform(ks[1], (HIDDEN1,), jnp.float32, -bnd1, bnd1)
    w2 = jax.random.uniform(ks[2], (HIDDEN1, HIDDEN2), jnp.float32, -bnd2, bnd2)
    b2 = jax.random.uniform(ks[3], (HIDDEN2,), jnp.float32, -bnd2, bnd2)
    w3 = jax.random.uniform(ks[4], (HIDDEN2, OUT_FEATURES), jnp.float32, -bnd3, bnd3)
    b3 = jax.random.uniform(ks[5], (OUT_FEATURES,), jnp.float32, -bnd3, bnd3)

    # Zero-padding is exact: padded input cols multiply zero weight rows; padded
    # hidden cols get zero weight/bias -> relu(0)=0 -> zero contribution onward.
    w1p = jnp.zeros((IN_PAD, H1_PAD), jnp.bfloat16).at[:IN_FEATURES, :HIDDEN1].set(
        w1.astype(jnp.bfloat16))
    b1p = jnp.zeros((1, H1_PAD), jnp.float32).at[0, :HIDDEN1].set(b1)
    w2p = jnp.zeros((H1_PAD, H2_PAD), jnp.bfloat16).at[:HIDDEN1, :HIDDEN2].set(
        w2.astype(jnp.bfloat16))
    b2p = jnp.zeros((1, H2_PAD), jnp.float32).at[0, :HIDDEN2].set(b2)
    w3p = jnp.zeros((H2_PAD, OUT_PAD), jnp.bfloat16).at[:HIDDEN2, :OUT_FEATURES].set(
        w3.astype(jnp.bfloat16))
    b3p = jnp.zeros((1, OUT_PAD), jnp.float32).at[0, :OUT_FEATURES].set(b3)
    return w1p, b1p, w2p, b2p, w3p, b3p


if __name__ == "__main__":
    key = jax.random.PRNGKey(0)
    kx, kp = jax.random.split(key)
    B = 8
    x = jax.random.normal(kx, (B, IN_FEATURES), jnp.float32)
    params = init_params(kp)

    out = simple_2l_forward(x, *params)
    out = jax.block_until_ready(out)

    # sanity: log_softmax rows should sum (in prob space) to ~1 over the 20 classes
    probs_sum = jnp.sum(jnp.exp(out), axis=1)
    assert out.shape == (B, OUT_FEATURES)
    assert bool(jnp.all(jnp.abs(probs_sum - 1.0) < 1e-4))
    assert bool(jnp.all(jnp.isfinite(out)))

    print("KERNEL_OK")
</pallas_src>

<mosaic_0001>
module attributes {stable_mosaic.version = 11 : i64} {
  func.func @simple_2l_kernel(%arg0: i32, %arg1: memref<8x384xbf16, #tpu.memory_space<vmem>>, %arg2: memref<384x128xbf16, #tpu.memory_space<vmem>>, %arg3: memref<1x128xf32, #tpu.memory_space<vmem>>, %arg4: memref<128x128xbf16, #tpu.memory_space<vmem>>, %arg5: memref<1x128xf32, #tpu.memory_space<vmem>>, %arg6: memref<128x128xbf16, #tpu.memory_space<vmem>>, %arg7: memref<1x128xf32, #tpu.memory_space<vmem>>, %arg8: memref<8x128xf32, #tpu.memory_space<vmem>>) attributes {dimension_semantics = [#tpu.dimension_semantics<parallel>], iteration_bounds = array<i64: 1>, scalar_prefetch = 0 : i64, scratch_operands = 0 : i64, tpu.core_type = #tpu.core_type<tc>, window_params = [{transform_indices = @transform_0, window_bounds = array<i64: 8, 384>}, {pipeline_mode = #tpu.pipeline_mode<synchronous>, transform_indices = @transform_1, window_bounds = array<i64: 384, 128>}, {pipeline_mode = #tpu.pipeline_mode<synchronous>, transform_indices = @transform_2, window_bounds = array<i64: 1, 128>}, {pipeline_mode = #tpu.pipeline_mode<synchronous>, transform_indices = @transform_3, window_bounds = array<i64: 128, 128>}, {pipeline_mode = #tpu.pipeline_mode<synchronous>, transform_indices = @transform_4, window_bounds = array<i64: 1, 128>}, {pipeline_mode = #tpu.pipeline_mode<synchronous>, transform_indices = @transform_5, window_bounds = array<i64: 128, 128>}, {pipeline_mode = #tpu.pipeline_mode<synchronous>, transform_indices = @transform_6, window_bounds = array<i64: 1, 128>}, {transform_indices = @transform_7, window_bounds = array<i64: 8, 128>}]} {
    %c0 = arith.constant 0 : index
    %c0_0 = arith.constant 0 : index
    %0 = vector.load %arg1[%c0, %c0_0] : memref<8x384xbf16, #tpu.memory_space<vmem>>, vector<8x384xbf16>
    %c0_1 = arith.constant 0 : index
    %c0_2 = arith.constant 0 : index
    %1 = vector.load %arg2[%c0_1, %c0_2] : memref<384x128xbf16, #tpu.memory_space<vmem>>, vector<384x128xbf16>
    %cst = arith.constant dense<0.000000e+00> : vector<8x128xf32>
    %2 = tpu.matmul %0, %1, %cst {dimension_numbers = #tpu.dot_dimension_numbers<[1], [0], [0], [1], [0, 0, 1, 1], [], []>} : vector<8x384xbf16>, vector<384x128xbf16>, vector<8x128xf32> -> vector<8x128xf32>
    %c0_3 = arith.constant 0 : index
    %c0_4 = arith.constant 0 : index
    %3 = vector.load %arg3[%c0_3, %c0_4] : memref<1x128xf32, #tpu.memory_space<vmem>>, vector<1x128xf32>
    %4 = vector.broadcast %3 : vector<1x128xf32> to vector<8x128xf32>
    %5 = arith.addf %2, %4 : vector<8x128xf32>
    %cst_5 = arith.constant 0.000000e+00 : f32
    %6 = vector.broadcast %cst_5 : f32 to vector<8x128xf32>
    %7 = arith.maximumf %5, %6 : vector<8x128xf32>
    %8 = arith.truncf %7 : vector<8x128xf32> to vector<8x128xbf16>
    %c0_6 = arith.constant 0 : index
    %c0_7 = arith.constant 0 : index
    %9 = vector.load %arg4[%c0_6, %c0_7] : memref<128x128xbf16, #tpu.memory_space<vmem>>, vector<128x128xbf16>
    %cst_8 = arith.constant dense<0.000000e+00> : vector<8x128xf32>
    %10 = tpu.matmul %8, %9, %cst_8 {dimension_numbers = #tpu.dot_dimension_numbers<[1], [0], [0], [1], [0, 0, 1, 1], [], []>} : vector<8x128xbf16>, vector<128x128xbf16>, vector<8x128xf32> -> vector<8x128xf32>
    %c0_9 = arith.constant 0 : index
    %c0_10 = arith.constant 0 : index
    %11 = vector.load %arg5[%c0_9, %c0_10] : memref<1x128xf32, #tpu.memory_space<vmem>>, vector<1x128xf32>
    %12 = vector.broadcast %11 : vector<1x128xf32> to vector<8x128xf32>
    %13 = arith.addf %10, %12 : vector<8x128xf32>
    %cst_11 = arith.constant 0.000000e+00 : f32
    %14 = vector.broadcast %cst_11 : f32 to vector<8x128xf32>
    %15 = arith.maximumf %13, %14 : vector<8x128xf32>
    %16 = arith.truncf %15 : vector<8x128xf32> to vector<8x128xbf16>
    %c0_12 = arith.constant 0 : index
    %c0_13 = arith.constant 0 : index
    %17 = vector.load %arg6[%c0_12, %c0_13] : memref<128x128xbf16, #tpu.memory_space<vmem>>, vector<128x128xbf16>
    %cst_14 = arith.constant dense<0.000000e+00> : vector<8x128xf32>
    %18 = tpu.matmul %16, %17, %cst_14 {dimension_numbers = #tpu.dot_dimension_numbers<[1], [0], [0], [1], [0, 0, 1, 1], [], []>} : vector<8x128xbf16>, vector<128x128xbf16>, vector<8x128xf32> -> vector<8x128xf32>
    %c0_15 = arith.constant 0 : index
    %c0_16 = arith.constant 0 : index
    %19 = vector.load %arg7[%c0_15, %c0_16] : memref<1x128xf32, #tpu.memory_space<vmem>>, vector<1x128xf32>
    %20 = vector.broadcast %19 : vector<1x128xf32> to vector<8x128xf32>
    %21 = arith.addf %18, %20 : vector<8x128xf32>
    %22 = tpu.iota {dimensions = array<i32: 1>} : vector<8x128xi32>
    %c20_i32 = arith.constant 20 : i32
    %23 = vector.broadcast %c20_i32 : i32 to vector<8x128xi32>
    %24 = arith.cmpi slt, %22, %23 : vector<8x128xi32>
    %cst_17 = arith.constant -1.000000e+30 : f32
    %25 = vector.broadcast %cst_17 : f32 to vector<8x128xf32>
    %26 = arith.select %24, %21, %25 : vector<8x128xi1>, vector<8x128xf32>
    %cst_18 = arith.constant dense<0xFF800000> : vector<8xf32>
    %27 = vector.multi_reduction <maximumf>, %26, %cst_18 [1] : vector<8x128xf32> to vector<8xf32>
    %28 = vector.shape_cast %27 : vector<8xf32> to vector<8x1xf32>
    %29 = vector.broadcast %28 : vector<8x1xf32> to vector<8x128xf32>
    %30 = arith.subf %26, %29 : vector<8x128xf32>
    %31 = math.exp %30 : vector<8x128xf32>
    %cst_19 = arith.constant dense<0.000000e+00> : vector<8xf32>
    %32 = vector.multi_reduction <add>, %31, %cst_19 [1] : vector<8x128xf32> to vector<8xf32>
    %33 = vector.shape_cast %32 : vector<8xf32> to vector<8x1xf32>
    %34 = math.log %33 : vector<8x1xf32>
    %35 = vector.broadcast %34 : vector<8x1xf32> to vector<8x128xf32>
    %36 = arith.subf %30, %35 : vector<8x128xf32>
    %c0_20 = arith.constant 0 : index
    %c0_21 = arith.constant 0 : index
    %37 = vector.load %arg8[%c0_20, %c0_21] : memref<8x128xf32, #tpu.memory_space<vmem>>, vector<8x128xf32>
    tpu.vector_store %arg8[%c0_20, %c0_21], %36 {strides = array<i32>} : memref<8x128xf32, #tpu.memory_space<vmem>>, vector<8x128xf32>,
    return
  }
  func.func @transform_0(%arg0: i32) -> (i32, i32) {
    %c0_i32 = arith.constant 0 : i32
    %c0_i32_0 = arith.constant 0 : i32
    return %arg0, %c0_i32 : i32, i32
  }
  func.func @transform_1(%arg0: i32) -> (i32, i32) {
    %c0_i32 = arith.constant 0 : i32
    %c0_i32_0 = arith.constant 0 : i32
    %c0_i32_1 = arith.constant 0 : i32
    return %c0_i32, %c0_i32_0 : i32, i32
  }
  func.func @transform_2(%arg0: i32) -> (i32, i32) {
    %c0_i32 = arith.constant 0 : i32
    %c0_i32_0 = arith.constant 0 : i32
    %c0_i32_1 = arith.constant 0 : i32
    return %c0_i32, %c0_i32_0 : i32, i32
  }
  func.func @transform_3(%arg0: i32) -> (i32, i32) {
    %c0_i32 = arith.constant 0 : i32
    %c0_i32_0 = arith.constant 0 : i32
    %c0_i32_1 = arith.constant 0 : i32
    return %c0_i32, %c0_i32_0 : i32, i32
  }
  func.func @transform_4(%arg0: i32) -> (i32, i32) {
    %c0_i32 = arith.constant 0 : i32
    %c0_i32_0 = arith.constant 0 : i32
    %c0_i32_1 = arith.constant 0 : i32
    return %c0_i32, %c0_i32_0 : i32, i32
  }
  func.func @transform_5(%arg0: i32) -> (i32, i32) {
    %c0_i32 = arith.constant 0 : i32
    %c0_i32_0 = arith.constant 0 : i32
    %c0_i32_1 = arith.constant 0 : i32
    return %c0_i32, %c0_i32_0 : i32, i32
  }
  func.func @transform_6(%arg0: i32) -> (i32, i32) {
    %c0_i32 = arith.constant 0 : i32
    %c0_i32_0 = arith.constant 0 : i32
    %c0_i32_1 = arith.constant 0 : i32
    return %c0_i32, %c0_i32_0 : i32, i32
  }
  func.func @transform_7(%arg0: i32) -> (i32, i32) {
    %c0_i32 = arith.constant 0 : i32
    %c0_i32_0 = arith.constant 0 : i32
    return %arg0, %c0_i32 : i32, i32
  }
}

</mosaic_0001>

<bundles_post_ra>
// kernel: simple_2l_forward.1
= control target key start
LH: loop header
LB: loop body
LE: loop exit
PB: predicated region body
PF: predicated region fallthrough
CT: control target
= control target key end

     0   :  { %12 = vsyncpa [#allocation3], 0  ;;  %s889_s0 = inlined_call_operand.vmem [shape: bf16[8,384], index: 0, kind: input, shape index: {}]   ;;  %s890_s1 = inlined_call_operand.hbm [shape: bf16[384,128], index: 1, kind: input, shape index: {}]   ;;  %s891_s2 = inlined_call_operand.vmem [shape: f32[1,128], index: 2, kind: input, shape index: {}]   ;;  %s892_s3 = inlined_call_operand.vmem [shape: bf16[128,128], index: 3, kind: input, shape index: {}]   ;;  %s893_s4 = inlined_call_operand.vmem [shape: f32[1,128], index: 4, kind: input, shape index: {}]   ;;  %s894_s5 = inlined_call_operand.hbm [shape: bf16[128,128], index: 5, kind: input, shape index: {}]   ;;  %s895_s6 = inlined_call_operand.vmem [shape: f32[1,128], index: 6, kind: input, shape index: {}]   ;;  %s896_s7 = inlined_call_operand.hbm [shape: f32[8,128], index: 7, kind: output, shape index: {}]  }
   0x1   :  { %13 = vsyncpa [#allocation6], 0 }
   0x2   :  { %14 = vsyncpa [#allocation4], 0  ;;  %s21_s26 = sshll.u32 %s890_s1, 4  ;;  %s796_s27 = smov [#allocation2]   ;;  %s22_s26 = int_to_ptr.hbm [resolvable:$true] %s21_s26 }
   0x3   :  { %s23_s28 = sshll.u32 %s796_s27, 4  ;;  %s40_s8 = sshll.u32 %s894_s5, 4  ;;  %s24_s28 = int_to_ptr.vmem [resolvable:$true] %s23_s28  ;;  %s41_s8 = int_to_ptr.hbm [resolvable:$true] %s40_s8 }
   0x4   :  { %s797_s9 = smov 64   ;;  %s798_s10 = smov 4  }
   0x5   :  { %29 = dma.hbm_to_vmem [thread:$0]  %s22_s26, 3072, %s24_s28, [#allocation3], %s797_s9, %s797_s9, %s798_s10  }
   0x6   :  { %s799_s11 = smov [#allocation5]  }
   0x7   :  { %s42_s12 = sshll.u32 %s799_s11, 4  ;;  %s43_s12 = int_to_ptr.vmem [resolvable:$true] %s42_s12 }
   0x8   :  { %48 = dma.hbm_to_vmem [thread:$0]  %s41_s8, 1024, %s43_s12, [#allocation6], %s797_s9, %s797_s9, %s798_s10  }
   0x9   :  { %790 = dma.done.wait [#allocation3], 3072  }
   0xa   :  { %791 = vsyncadd [#allocation3], 4294964224 }
   0xb   :  { %792 = dma.done.wait [#allocation6], 1024  }
   0xc   :  { %793 = vsyncadd [#allocation6], 4294966272  ;;  %v673_v0 = vld [vmem:[#allocation2 + $0x38] sm:$0xff]  ;;  %v672_v3 = vld [vmem:[#allocation2 + $0x30] sm:$0xff] }
   0xd   :  { %v681_v1 = vld [vmem:[#allocation2 + $0x78] sm:$0xff]  ;;  %268 = vmatpush.bf16.msra.mxu0 %v673_v0  ;;  %v680_v4 = vld [vmem:[#allocation2 + $0x70] sm:$0xff]  ;;  %v671_v6 = vld [vmem:[#allocation2 + $0x28] sm:$0xff] }
   0xe   :  { %v689_v2 = vld [vmem:[#allocation2 + $0xb8] sm:$0xff]  ;;  %281 = vmatpush.bf16.msra.mxu1 %v681_v1  ;;  %v688_v5 = vld [vmem:[#allocation2 + $0xb0] sm:$0xff]  ;;  %v679_v7 = vld [vmem:[#allocation2 + $0x68] sm:$0xff] }
   0xf   :  { %294 = vmatpush.bf16.msra.mxu2 %v689_v2  ;;  %v687_v8 = vld [vmem:[#allocation2 + $0xa8] sm:$0xff]  ;;  %v697_v9 = vld [vmem:[%s892_s3 + $0x38] sm:$0xff]  ;;  %v670_v10 = vld [vmem:[#allocation2 + $0x20] sm:$0xff]  ;;  %v473_v2 = vlaneseq }
  0x10   :  { %v678_v11 = vld [vmem:[#allocation2 + $0x60] sm:$0xff]  ;;  %377 = vmatpush.bf16.msra.mxu3 %v697_v9  ;;  %v696_v13 = vld [vmem:[%s892_s3 + $0x30] sm:$0xff]  ;;  %v669_v14 = vld [vmem:[#allocation2 + $0x18] sm:$0xff] }
  0x11   :  { %269 = vmatpush.bf16.msra.mxu0 %v672_v3  ;;  %v686_v12 = vld [vmem:[#allocation2 + $0xa0] sm:$0xff]  ;;  %v677_v15 = vld [vmem:[#allocation2 + $0x58] sm:$0xff]  ;;  %v695_v17 = vld [vmem:[%s892_s3 + $0x28] sm:$0xff]  ;;  %v474_v3 = vand.u32 127, %v473_v2 }
  0x12   :  { %282 = vmatpush.bf16.msra.mxu1 %v680_v4  ;;  %v685_v16 = vld [vmem:[#allocation2 + $0x98] sm:$0xff]  ;;  %v668_v18 = vld [vmem:[#allocation2 + $0x10] sm:$0xff]  ;;  %v694_v21 = vld [vmem:[%s892_s3 + $0x20] sm:$0xff] }
  0x13   :  { %295 = vmatpush.bf16.msra.mxu2 %v688_v5  ;;  %v676_v19 = vld [vmem:[#allocation2 + $0x50] sm:$0xff]  ;;  %v667_v22 = vld [vmem:[#allocation2 + $0x8] sm:$0xff]  ;;  %v59_v24 = vld [vmem:[%s889_s0] sm:$0xff]  ;;  %vm475_vm0 = vcmp.lt.s32.totalorder %v474_v3, 20 }
  0x14   :  { %378 = vmatpush.bf16.msra.mxu3 %v696_v13  ;;  %v684_v20 = vld [vmem:[#allocation2 + $0x90] sm:$0xff]  ;;  %v675_v23 = vld [vmem:[#allocation2 + $0x48] sm:$0xff]  ;;  %v693_v27 = vld [vmem:[%s892_s3 + $0x18] sm:$0xff]  ;;  %v115_v28 = vunpack.c.l.b16 %v59_v24  ;;  %v116_v29 = vunpack.c.h.b16 %v59_v24 }
  0x15   :  { %270 = vmatpush.bf16.msra.mxu0 %v671_v6  ;;  %v683_v25 = vld [vmem:[#allocation2 + $0x88] sm:$0xff]  ;;  %v666_v30 = vld [vmem:[#allocation2] sm:$0xff]  ;;  %v692_v37 = vld [vmem:[%s892_s3 + $0x10] sm:$0xff] }
  0x16   :  { %283 = vmatpush.bf16.msra.mxu1 %v679_v7  ;;  %v60_v26 = vld [vmem:[%s889_s0 + $0x8] sm:$0xf]  ;;  %v674_v31 = vld [vmem:[#allocation2 + $0x40] sm:$0xff]  ;;  %v118_v34 = vpack.c.b16 %v115_v28, %v115_v28  ;;  %v119_v35 = vpack.c.b16 %v116_v29, %v116_v29  ;;  %v705_v40 = vld [vmem:[#allocation5 + $0x38] sm:$0xff] }
  0x17   :  { %296 = vmatpush.bf16.msra.mxu2 %v687_v8  ;;  %v117_v32 = vunpack.c.l.b16 %v60_v26  ;;  %v682_v33 = vld [vmem:[#allocation2 + $0x80] sm:$0xff]  ;;  %v691_v38 = vld [vmem:[%s892_s3 + $0x8] sm:$0xff]  ;;  %v704_v41 = vld [vmem:[#allocation5 + $0x30] sm:$0xff] }
  0x18   :  { %379 = vmatpush.bf16.msra.mxu3 %v695_v17  ;;  %v690_v39 = vld [vmem:[%s892_s3] sm:$0xff]  ;;  %v703_v42 = vld [vmem:[#allocation5 + $0x28] sm:$0xff]  ;;  %v701_v45 = vld [vmem:[#allocation5 + $0x18] sm:$0xff] }
  0x19   :  { %271 = vmatpush.bf16.msra.mxu0 %v670_v10  ;;  %v120_v36 = vpack.c.b16 %v117_v32, %v117_v32  ;;  %v702_v43 = vld [vmem:[#allocation5 + $0x20] sm:$0xff]  ;;  %v700_v49 = vld [vmem:[#allocation5 + $0x10] sm:$0xff]  ;;  %v699_v58 = vld [vmem:[#allocation5 + $0x8] sm:$0xff] }
  0x1a   :  { %284 = vmatpush.bf16.msra.mxu1 %v678_v11  ;;  %v711_v44 = vld [vmem:[%s891_s2] ss:$0 sm:$0xff] }
  0x1b   :  { %297 = vmatpush.bf16.msra.mxu2 %v686_v12  ;;  %v698_v59 = vld [vmem:[#allocation5] sm:$0xff] }
  0x1c   :  { %380 = vmatpush.bf16.msra.mxu3 %v694_v21  ;;  %v712_v60 = vld [vmem:[%s893_s4] ss:$0 sm:$0xff]  ;;  %s800_s4 = smov [#allocation7]  }
  0x1d   :  { %272 = vmatpush.bf16.msra.mxu0 %v669_v14  ;;  %v713_v4 = vld [vmem:[%s895_s6] ss:$0 sm:$0xff]  ;;  %s493_s11 = sshll.u32 %s800_s4, 4  ;;  %s495_s6 = sshll.u32 %s896_s7, 4  ;;  %s494_s11 = int_to_ptr.vmem [resolvable:$true] %s493_s11  ;;  %s496_s6 = int_to_ptr.hbm [resolvable:$true] %s495_s6 }
  0x1e   :  { %285 = vmatpush.bf16.msra.mxu1 %v677_v15 }
  0x1f   :  { %298 = vmatpush.bf16.msra.mxu2 %v685_v16 }
  0x20   :  { %381 = vmatpush.bf16.msra.mxu3 %v693_v27 }
  0x21   :  { %273 = vmatpush.bf16.msra.mxu0 %v668_v18 }
  0x22   :  { %286 = vmatpush.bf16.msra.mxu1 %v676_v19 }
  0x23   :  { %299 = vmatpush.bf16.msra.mxu2 %v684_v20 }
  0x24   :  { %382 = vmatpush.bf16.msra.mxu3 %v692_v37 }
  0x25   :  { %274 = vmatpush.bf16.msra.mxu0 %v667_v22 }
  0x26   :  { %287 = vmatpush.bf16.msra.mxu1 %v675_v23 }
  0x27   :  { %300 = vmatpush.bf16.msra.mxu2 %v683_v25 }
  0x28   :  { %383 = vmatpush.bf16.msra.mxu3 %v691_v38 }
  0x29   :  { %275 = vmatpush.bf16.msra.mxu0 %v666_v30 }
  0x2a   :  { %288 = vmatpush.bf16.msra.mxu1 %v674_v31 }
  0x2b   :  { %301 = vmatpush.bf16.msra.mxu2 %v682_v33 }
  0x2c   :  { %276 = vmatmul.bf16.vlgmr.msra.gmra.mxu0 %v118_v34  ;;  %384 = vmatpush.bf16.msra.mxu3 %v690_v39 }
  0x2d   :  { %289 = vmatmul.bf16.vlgmr.msra.gmra.mxu1 %v119_v35  ;;  %460 = vmatpush.bf16.msrb.mxu0 %v705_v40 }
  0x2e   :  { %302 = vmatmul.bf16.vlgmr.msra.gmra.mxu2 %v120_v36 }
  0x31   :  { %461 = vmatpush.bf16.msrb.mxu0 %v704_v41 }
  0x35   :  { %462 = vmatpush.bf16.msrb.mxu0 %v703_v42 }
  0x39   :  { %463 = vmatpush.bf16.msrb.mxu0 %v702_v43 }
  0x3d   :  { %464 = vmatpush.bf16.msrb.mxu0 %v701_v45 }
  0x41   :  { %465 = vmatpush.bf16.msrb.mxu0 %v700_v49 }
  0x45   :  { %466 = vmatpush.bf16.msrb.mxu0 %v699_v58 }
  0x49   :  { %467 = vmatpush.bf16.msrb.mxu0 %v698_v59 }
  0xa9   :  { %v277_v46 = vpop.f32.mrf.mxu0 }
  0xaa   :  { %v290_v47 = vpop.f32.mrf.mxu1  ;;  %v278_v48 = vadd.f32 %v711_v44, %v277_v46 }
  0xac   :  { %v291_v50 = vadd.f32 %v290_v47, %v278_v48 }
  0xb1   :  { %v303_v51 = vpop.f32.mrf.mxu2  ;;  %v279_v53 = vpop.f32.mrf.mxu0 }
  0xb2   :  { %v304_v52 = vadd.f32 %v303_v51, %v291_v50  ;;  %v292_v54 = vpop.f32.mrf.mxu1 }
  0xb4   :  { %v307_v55 = vmax.f32 %v304_v52, 0.0 }
  0xb6   :  { %v308_v56 = vpack.c.bf16 %v307_v55, %v307_v55 }
  0xb8   :  { %385 = vmatmul.bf16.vlgmr.msra.gmra.mxu3 %v308_v56 }
  0xb9   :  { %v305_v57 = vpop.f32.mrf.mxu2 }
 0x13b   :  { %v386_v61 = vpop.f32.mrf.mxu3 }
 0x13c   :  { %v387_v62 = vadd.f32 %v712_v60, %v386_v61 }
 0x13e   :  { %v390_v63 = vmax.f32 %v387_v62, 0.0 }
 0x140   :  { %v391_v0 = vpack.c.bf16 %v390_v63, %v390_v63 }
 0x142   :  { %468 = vmatmul.bf16.vlgmr.msrb.gmra.mxu0 %v391_v0 }
 0x143   :  { %v388_v1 = vpop.f32.mrf.mxu3 }
 0x1bf   :  { %v469_v5 = vpop.f32.mrf.mxu0 }
 0x1c0   :  { %v470_v6 = vadd.f32 %v713_v4, %v469_v5 }
 0x1c2   :  { %v476_v7 = vsel %vm475_vm0, %v470_v6, -1e+30 }
 0x1c3   :  { %477 = vmax.xlane.f32.xlu0 %v476_v7 }
 0x1c7   :  { %v471_v8 = vpop.f32.mrf.mxu0 }
 0x236   :  { %v478_v9 = vpop.xlane.xlu0 %477 }
 0x237   :  { %v479_v10 = vsub.f32 %v476_v7, %v478_v9 }
 0x239   :  { %v480_v11 = vmul.f32 1.442695, %v479_v10 }
 0x23b   :  { %714 = vpow2.f32 %v480_v11 }
 0x241   :  { %v715_v12 = vpop.eup %714 }
 0x242   :  { %482 = vadd.xlane.f32.xlu0 %v715_v12 }
 0x2b5   :  { %v483_v13 = vpop.xlane.xlu0 %482 }
 0x2b6   :  { %716 = vlog2.f32 %v483_v13 }
 0x2bc   :  { %v717_v14 = vpop.eup %716 }
 0x2bd   :  { %v485_v15 = vmul.f32 0.6931472, %v717_v14 }
 0x2bf   :  { %v486_v16 = vsub.f32 %v479_v10, %v485_v15 }
 0x2c1   :  { %487 = vst [vmem:[#allocation7] sm:$0xff] %v486_v16 }
 0x2c2   :  { %498 = dma.vmem_to_hbm [thread:$0]  %s494_s11, 128, %s496_s6, [#allocation4]  }
 0x2c3   :  { %794 = dma.done.wait [#allocation4], 128  }
 0x2c4   :  { %795 = vsyncadd [#allocation4], 4294967168 }
 0x2c5   :  { %503 = vsyncpa [#allocation3], 1 }
 0x2c6   :  { %504 = vsyncpa [#allocation6], 1 }
 0x2c7   :  { %505 = vsyncpa [#allocation4], 1 }

</bundles_post_ra>
